<compile_context>
chip_gen: v7x
topology: tpu7x:2x2x1
jax: 0.10.0
libtpu: 0.0.40
codegen_flags: <defaults>
</compile_context>

<pallas_src>
import functools

import jax
import jax.numpy as jnp
from jax.experimental import pallas as pl
from jax.experimental.pallas import tpu as pltpu

D_IN, D_H1, D_H2, D_OUT = 512, 256, 256, 128
_FLOPS_PER_ROW = 2 * (D_IN * D_H1 + D_H1 * D_H2 + D_H2 * D_OUT)
_WEIGHT_BYTES = (D_IN * D_H1 + D_H1 * D_H2 + D_H2 * D_OUT) * 2 + (D_H1 + D_H2 + D_OUT) * 4


def encoder_kernel(x_ref, w1_ref, b1_ref, w2_ref, b2_ref, w3_ref, b3_ref, o_ref):
    # x arrives as f32 (4 B/elem of HBM traffic only); cast to bf16 on the VPU for the MXU.
    x = x_ref[...].astype(jnp.bfloat16)
    # Layer 1: Linear(512 -> 256) + ReLU. bf16 operands, f32 accumulation/bias/ReLU.
    h1 = jnp.dot(x, w1_ref[...], preferred_element_type=jnp.float32)
    h1 = jnp.maximum(h1 + b1_ref[...], 0.0)
    # Layer 2: Linear(256 -> 256) + ReLU
    h2 = jnp.dot(h1.astype(jnp.bfloat16), w2_ref[...], preferred_element_type=jnp.float32)
    h2 = jnp.maximum(h2 + b2_ref[...], 0.0)
    # Layer 3: Linear(256 -> 128), no activation (output stays lane-dense at 128)
    out = jnp.dot(h2.astype(jnp.bfloat16), w3_ref[...], preferred_element_type=jnp.float32)
    o_ref[...] = (out + b3_ref[...]).astype(o_ref.dtype)


def _round_up(n, m):
    return ((n + m - 1) // m) * m


def _pick_tb(batch, tb_cap):
    """Batch-tile size.  Big tiles amortize the ~0.35us per-grid-step overhead; we only
    force >=2 grid steps (for v7x megacore sharding of the 'parallel' batch axis) when
    each half would still be >= 512 rows, so 1-TC chips lose at most one step-overhead
    against a full-size tile of work."""
    if batch <= tb_cap:
        if batch >= 1024:                                   # halves are each >= 512 rows
            return _round_up(pl.cdiv(batch, 2), 8)
        return batch                                        # single full-array tile, no pad
    return min(tb_cap, _round_up(pl.cdiv(batch, 2), 8))


def _build_call(b_pad, tb, out_dtype):
    def const_spec(shape):
        # Weights/biases: constant index_map -> VMEM-resident, no re-DMA across steps.
        return pl.BlockSpec(shape, lambda i: (0, 0))

    grid_spec = pl.GridSpec(
        grid=(b_pad // tb,),
        in_specs=[
            pl.BlockSpec((tb, D_IN), lambda i: (i, 0)),     # x tile streams with the grid
            const_spec((D_IN, D_H1)),                       # w1
            const_spec((1, D_H1)),                          # b1
            const_spec((D_H1, D_H2)),                       # w2
            const_spec((1, D_H2)),                          # b2
            const_spec((D_H2, D_OUT)),                      # w3
            const_spec((1, D_OUT)),                         # b3
        ],
        out_specs=pl.BlockSpec((tb, D_OUT), lambda i: (i, 0)),
    )
    out_bytes = jnp.dtype(out_dtype).itemsize
    cost = pl.CostEstimate(
        flops=b_pad * _FLOPS_PER_ROW,
        transcendentals=0,
        bytes_accessed=b_pad * (D_IN * 4 + D_OUT * out_bytes) + _WEIGHT_BYTES,
    )
    return pl.pallas_call(
        encoder_kernel,
        out_shape=jax.ShapeDtypeStruct((b_pad, D_OUT), out_dtype),
        grid_spec=grid_spec,
        compiler_params=pltpu.CompilerParams(
            dimension_semantics=("parallel",),  # batch tiles shard across TCs on v7x
        ),
        cost_estimate=cost,
    )


@functools.partial(jax.jit, static_argnames=("tb_cap", "out_dtype"))
def encoder_forward(x, params, *, tb_cap=1024, out_dtype=jnp.float32):
    """x: (B, 512) float32 (cast to bf16 inside the kernel).
    params: output of prepare_params() (bf16 weights, f32 (1, N) biases).
    out_dtype=jnp.bfloat16 halves output writeback if the consumer tolerates it."""
    batch = x.shape[0]
    tb = _pick_tb(batch, tb_cap)
    b_pad = pl.cdiv(batch, tb) * tb
    if b_pad != batch:
        x = jnp.pad(x, ((0, b_pad - batch), (0, 0)))  # only when batch isn't a tile multiple

    out = _build_call(b_pad, tb, out_dtype)(
        x,
        params["w1"], params["b1"],
        params["w2"], params["b2"],
        params["w3"], params["b3"],
    )
    return out[:batch] if b_pad != batch else out


def prepare_params(params_f32):
    """One-time cast of weight matrices to bf16 (MXU-native); biases stay f32.
    Call once at init/load time, NOT per forward call."""
    return {
        "w1": params_f32["w1"].astype(jnp.bfloat16), "b1": params_f32["b1"],
        "w2": params_f32["w2"].astype(jnp.bfloat16), "b2": params_f32["b2"],
        "w3": params_f32["w3"].astype(jnp.bfloat16), "b3": params_f32["b3"],
    }


def init_params(key):
    """Deterministic init mimicking nn.Linear's uniform(-1/sqrt(fan_in), 1/sqrt(fan_in))."""
    ks = jax.random.split(key, 6)

    def lin(kw, kb, fan_in, fan_out):
        bound = 1.0 / jnp.sqrt(fan_in)
        w = jax.random.uniform(kw, (fan_in, fan_out), jnp.float32, -bound, bound)
        b = jax.random.uniform(kb, (1, fan_out), jnp.float32, -bound, bound)
        return w, b

    w1, b1 = lin(ks[0], ks[1], D_IN, D_H1)
    w2, b2 = lin(ks[2], ks[3], D_H1, D_H2)
    w3, b3 = lin(ks[4], ks[5], D_H2, D_OUT)
    return {"w1": w1, "b1": b1, "w2": w2, "b2": b2, "w3": w3, "b3": b3}


def encoder_ref(x, p):
    h1 = jnp.maximum(x @ p["w1"] + p["b1"], 0.0)
    h2 = jnp.maximum(h1 @ p["w2"] + p["b2"], 0.0)
    return h2 @ p["w3"] + p["b3"]


if __name__ == "__main__":
    key = jax.random.PRNGKey(0)
    k_params, k_x = jax.random.split(key)
    params_f32 = init_params(k_params)
    params = prepare_params(params_f32)  # bf16 weights cast exactly once

    B = 64  # small demo batch -> single full-array tile, no padding, one grid step
    x = jax.random.normal(k_x, (B, D_IN), jnp.float32)

    out = jax.block_until_ready(encoder_forward(x, params))
    ref = encoder_ref(x, params_f32)

    assert out.shape == (B, D_OUT)
    # bf16 matmul operands with f32 accumulation -> loosened tolerance vs pure-f32 reference
    assert jnp.allclose(out, ref, atol=5e-2, rtol=5e-2), float(jnp.max(jnp.abs(out - ref)))

    print("KERNEL_OK")
</pallas_src>

<mosaic_0001>
module attributes {stable_mosaic.version = 11 : i64} {
  func.func @encoder_kernel(%arg0: i32, %arg1: memref<64x512xf32, #tpu.memory_space<vmem>>, %arg2: memref<512x256xbf16, #tpu.memory_space<vmem>>, %arg3: memref<1x256xf32, #tpu.memory_space<vmem>>, %arg4: memref<256x256xbf16, #tpu.memory_space<vmem>>, %arg5: memref<1x256xf32, #tpu.memory_space<vmem>>, %arg6: memref<256x128xbf16, #tpu.memory_space<vmem>>, %arg7: memref<1x128xf32, #tpu.memory_space<vmem>>, %arg8: memref<64x128xf32, #tpu.memory_space<vmem>>) attributes {dimension_semantics = [#tpu.dimension_semantics<parallel>], iteration_bounds = array<i64: 1>, scalar_prefetch = 0 : i64, scratch_operands = 0 : i64, tpu.core_type = #tpu.core_type<tc>, window_params = [{transform_indices = @transform_0, window_bounds = array<i64: 64, 512>}, {pipeline_mode = #tpu.pipeline_mode<synchronous>, transform_indices = @transform_1, window_bounds = array<i64: 512, 256>}, {pipeline_mode = #tpu.pipeline_mode<synchronous>, transform_indices = @transform_2, window_bounds = array<i64: 1, 256>}, {pipeline_mode = #tpu.pipeline_mode<synchronous>, transform_indices = @transform_3, window_bounds = array<i64: 256, 256>}, {pipeline_mode = #tpu.pipeline_mode<synchronous>, transform_indices = @transform_4, window_bounds = array<i64: 1, 256>}, {pipeline_mode = #tpu.pipeline_mode<synchronous>, transform_indices = @transform_5, window_bounds = array<i64: 256, 128>}, {pipeline_mode = #tpu.pipeline_mode<synchronous>, transform_indices = @transform_6, window_bounds = array<i64: 1, 128>}, {transform_indices = @transform_7, window_bounds = array<i64: 64, 128>}]} {
    %c0 = arith.constant 0 : index
    %c0_0 = arith.constant 0 : index
    %0 = vector.load %arg1[%c0, %c0_0] : memref<64x512xf32, #tpu.memory_space<vmem>>, vector<64x512xf32>
    %1 = arith.truncf %0 : vector<64x512xf32> to vector<64x512xbf16>
    %c0_1 = arith.constant 0 : index
    %c0_2 = arith.constant 0 : index
    %2 = vector.load %arg2[%c0_1, %c0_2] : memref<512x256xbf16, #tpu.memory_space<vmem>>, vector<512x256xbf16>
    %cst = arith.constant dense<0.000000e+00> : vector<64x256xf32>
    %3 = tpu.matmul %1, %2, %cst {dimension_numbers = #tpu.dot_dimension_numbers<[1], [0], [0], [1], [0, 0, 1, 1], [], []>} : vector<64x512xbf16>, vector<512x256xbf16>, vector<64x256xf32> -> vector<64x256xf32>
    %c0_3 = arith.constant 0 : index
    %c0_4 = arith.constant 0 : index
    %4 = vector.load %arg3[%c0_3, %c0_4] : memref<1x256xf32, #tpu.memory_space<vmem>>, vector<1x256xf32>
    %5 = vector.broadcast %4 : vector<1x256xf32> to vector<64x256xf32>
    %6 = arith.addf %3, %5 : vector<64x256xf32>
    %cst_5 = arith.constant 0.000000e+00 : f32
    %7 = vector.broadcast %cst_5 : f32 to vector<64x256xf32>
    %8 = arith.maximumf %6, %7 : vector<64x256xf32>
    %9 = arith.truncf %8 : vector<64x256xf32> to vector<64x256xbf16>
    %c0_6 = arith.constant 0 : index
    %c0_7 = arith.constant 0 : index
    %10 = vector.load %arg4[%c0_6, %c0_7] : memref<256x256xbf16, #tpu.memory_space<vmem>>, vector<256x256xbf16>
    %cst_8 = arith.constant dense<0.000000e+00> : vector<64x256xf32>
    %11 = tpu.matmul %9, %10, %cst_8 {dimension_numbers = #tpu.dot_dimension_numbers<[1], [0], [0], [1], [0, 0, 1, 1], [], []>} : vector<64x256xbf16>, vector<256x256xbf16>, vector<64x256xf32> -> vector<64x256xf32>
    %c0_9 = arith.constant 0 : index
    %c0_10 = arith.constant 0 : index
    %12 = vector.load %arg5[%c0_9, %c0_10] : memref<1x256xf32, #tpu.memory_space<vmem>>, vector<1x256xf32>
    %13 = vector.broadcast %12 : vector<1x256xf32> to vector<64x256xf32>
    %14 = arith.addf %11, %13 : vector<64x256xf32>
    %cst_11 = arith.constant 0.000000e+00 : f32
    %15 = vector.broadcast %cst_11 : f32 to vector<64x256xf32>
    %16 = arith.maximumf %14, %15 : vector<64x256xf32>
    %17 = arith.truncf %16 : vector<64x256xf32> to vector<64x256xbf16>
    %c0_12 = arith.constant 0 : index
    %c0_13 = arith.constant 0 : index
    %18 = vector.load %arg6[%c0_12, %c0_13] : memref<256x128xbf16, #tpu.memory_space<vmem>>, vector<256x128xbf16>
    %cst_14 = arith.constant dense<0.000000e+00> : vector<64x128xf32>
    %19 = tpu.matmul %17, %18, %cst_14 {dimension_numbers = #tpu.dot_dimension_numbers<[1], [0], [0], [1], [0, 0, 1, 1], [], []>} : vector<64x256xbf16>, vector<256x128xbf16>, vector<64x128xf32> -> vector<64x128xf32>
    %c0_15 = arith.constant 0 : index
    %c0_16 = arith.constant 0 : index
    %20 = vector.load %arg7[%c0_15, %c0_16] : memref<1x128xf32, #tpu.memory_space<vmem>>, vector<1x128xf32>
    %21 = vector.broadcast %20 : vector<1x128xf32> to vector<64x128xf32>
    %22 = arith.addf %19, %21 : vector<64x128xf32>
    %c0_17 = arith.constant 0 : index
    %c0_18 = arith.constant 0 : index
    %23 = vector.load %arg8[%c0_17, %c0_18] : memref<64x128xf32, #tpu.memory_space<vmem>>, vector<64x128xf32>
    tpu.vector_store %arg8[%c0_17, %c0_18], %22 {strides = array<i32>} : memref<64x128xf32, #tpu.memory_space<vmem>>, vector<64x128xf32>,
    return
  }
  func.func @transform_0(%arg0: i32) -> (i32, i32) {
    %c0_i32 = arith.constant 0 : i32
    %c0_i32_0 = arith.constant 0 : i32
    return %arg0, %c0_i32 : i32, i32
  }
  func.func @transform_1(%arg0: i32) -> (i32, i32) {
    %c0_i32 = arith.constant 0 : i32
    %c0_i32_0 = arith.constant 0 : i32
    %c0_i32_1 = arith.constant 0 : i32
    return %c0_i32, %c0_i32_0 : i32, i32
  }
  func.func @transform_2(%arg0: i32) -> (i32, i32) {
    %c0_i32 = arith.constant 0 : i32
    %c0_i32_0 = arith.constant 0 : i32
    %c0_i32_1 = arith.constant 0 : i32
    return %c0_i32, %c0_i32_0 : i32, i32
  }
  func.func @transform_3(%arg0: i32) -> (i32, i32) {
    %c0_i32 = arith.constant 0 : i32
    %c0_i32_0 = arith.constant 0 : i32
    %c0_i32_1 = arith.constant 0 : i32
    return %c0_i32, %c0_i32_0 : i32, i32
  }
  func.func @transform_4(%arg0: i32) -> (i32, i32) {
    %c0_i32 = arith.constant 0 : i32
    %c0_i32_0 = arith.constant 0 : i32
    %c0_i32_1 = arith.constant 0 : i32
    return %c0_i32, %c0_i32_0 : i32, i32
  }
  func.func @transform_5(%arg0: i32) -> (i32, i32) {
    %c0_i32 = arith.constant 0 : i32
    %c0_i32_0 = arith.constant 0 : i32
    %c0_i32_1 = arith.constant 0 : i32
    return %c0_i32, %c0_i32_0 : i32, i32
  }
  func.func @transform_6(%arg0: i32) -> (i32, i32) {
    %c0_i32 = arith.constant 0 : i32
    %c0_i32_0 = arith.constant 0 : i32
    %c0_i32_1 = arith.constant 0 : i32
    return %c0_i32, %c0_i32_0 : i32, i32
  }
  func.func @transform_7(%arg0: i32) -> (i32, i32) {
    %c0_i32 = arith.constant 0 : i32
    %c0_i32_0 = arith.constant 0 : i32
    return %arg0, %c0_i32 : i32, i32
  }
}

</mosaic_0001>

<bundles_post_ra>
// kernel: encoder_forward.1
= control target key start
LH: loop header
LB: loop body
LE: loop exit
PB: predicated region body
PF: predicated region fallthrough
CT: control target
= control target key end

     0   :  { %12 = vsyncpa [#allocation3], 0  ;;  %s1867_s0 = inlined_call_operand.hbm [shape: f32[64,512], index: 0, kind: input, shape index: {}]   ;;  %s1868_s1 = inlined_call_operand.hbm [shape: bf16[512,256], index: 1, kind: input, shape index: {}]   ;;  %s1869_s2 = inlined_call_operand.vmem [shape: f32[1,256], index: 2, kind: input, shape index: {}]   ;;  %s1870_s3 = inlined_call_operand.hbm [shape: bf16[256,256], index: 3, kind: input, shape index: {}]   ;;  %s1871_s4 = inlined_call_operand.vmem [shape: f32[1,256], index: 4, kind: input, shape index: {}]   ;;  %s1872_s5 = inlined_call_operand.hbm [shape: bf16[256,128], index: 5, kind: input, shape index: {}]   ;;  %s1873_s6 = inlined_call_operand.vmem [shape: f32[1,128], index: 6, kind: input, shape index: {}]   ;;  %s1874_s7 = inlined_call_operand.hbm [shape: f32[64,128], index: 7, kind: output, shape index: {}]  }
   0x1   :  { %13 = vsyncpa [#allocation6], 0 }
   0x2   :  { %14 = vsyncpa [#allocation9], 0 }
   0x3   :  { %15 = vsyncpa [#allocation4], 0  ;;  %s1699_s24 = smov [#allocation5]   ;;  %s1581_s28 = scalar_lea.hbm %s1868_s1, 8192 }
   0x4   :  { %s33_s25 = sshll.u32 %s1699_s24, 4  ;;  %p1582_p0 = scmp.ne.s32.totalorder %s1868_s1, %s1581_s28  ;;  %s34_s25 = int_to_ptr.vmem [resolvable:$true] %s33_s25 }
   0x5   :  { %p1585_p1 = scmp.lt.u32.totalorder %s1581_s28, %s1868_s1 }
   0x7   :  { %p1587_p2 = pnand %p1585_p1, %p1582_p0 }
   0x9   :  { %1590 = shalt.err (!%p1587_p2)
}
   0xa   :  { %s1591_s10 = scalar_lea.vmem %s34_s25, 8192  ;;  %p1596_p4 = scmp.lt.s32.totalorder %s34_s25, %s34_s25 }
   0xb   :  { %p1592_p3 = scmp.ne.s32.totalorder %s34_s25, %s1591_s10  ;;  %p1597_p5 = scmp.lt.s32.totalorder %s1591_s10, %s1591_s10 }
   0xd   :  { %p1598_p6 = por %p1597_p5, %p1596_p4 }
   0xf   :  { %p1599_p7 = pnand %p1598_p6, %p1592_p3 }
  0x11   :  { %1602 = shalt.err (!%p1599_p7)
}
  0x12   :  { %s1700_s11 = smov 128   ;;  %s1701_s12 = smov 8  }
  0x13   :  { %39 = dma.hbm_to_vmem [thread:$0]  %s1868_s1, 8192, %s34_s25, [#allocation6], %s1700_s11, %s1700_s11, %s1701_s12  }
  0x14   :  { %s1702_s15 = smov [#allocation2]   ;;  %s1603_s19 = scalar_lea.hbm %s1867_s0, 4096 }
  0x15   :  { %s21_s16 = sshll.u32 %s1702_s15, 4  ;;  %p1604_p8 = scmp.ne.s32.totalorder %s1867_s0, %s1603_s19  ;;  %s22_s16 = int_to_ptr.vmem [resolvable:$true] %s21_s16 }
  0x16   :  { %p1607_p9 = scmp.lt.u32.totalorder %s1603_s19, %s1867_s0 }
  0x18   :  { %p1609_p10 = pnand %p1607_p9, %p1604_p8 }
  0x1a   :  { %1612 = shalt.err (!%p1609_p10)
}
  0x1b   :  { %s1613_s24 = scalar_lea.vmem %s22_s16, 4096  ;;  %p1618_p12 = scmp.lt.s32.totalorder %s22_s16, %s22_s16 }
  0x1c   :  { %p1614_p11 = scmp.ne.s32.totalorder %s22_s16, %s1613_s24  ;;  %p1619_p13 = scmp.lt.s32.totalorder %s1613_s24, %s1613_s24 }
  0x1e   :  { %p1620_p0 = por %p1619_p13, %p1618_p12 }
  0x20   :  { %p1621_p1 = pnand %p1620_p0, %p1614_p11 }
  0x22   :  { %1624 = shalt.err (!%p1621_p1)
}
  0x23   :  { %s1703_s1 = smov 512   ;;  %s1704_s25 = smov 32  }
  0x24   :  { %27 = dma.hbm_to_vmem [thread:$0]  %s1867_s0, 4096, %s22_s16, [#allocation3], %s1703_s1, %s1703_s1, %s1704_s25  }
  0x25   :  { %s1705_s28 = smov [#allocation7]   ;;  %s1706_s30 = smov [#allocation8]  }
  0x26   :  { %s47_s29 = sshll.u32 %s1705_s28, 4  ;;  %s61_s8 = sshll.u32 %s1706_s30, 4  ;;  %s48_s29 = int_to_ptr.vmem [resolvable:$true] %s47_s29  ;;  %s1777_s8 = int_to_ptr.vmem [resolvable:$true] %s61_s8 }
  0x27   :  { %s1625_s13 = scalar_lea.hbm %s1870_s3, 4096 }
  0x28   :  { %p1626_p2 = scmp.ne.s32.totalorder %s1870_s3, %s1625_s13  ;;  %p1629_p3 = scmp.lt.u32.totalorder %s1625_s13, %s1870_s3 }
  0x2a   :  { %p1631_p4 = pnand %p1629_p3, %p1626_p2 }
  0x2c   :  { %1634 = shalt.err (!%p1631_p4)
}
  0x2d   :  { %s1635_s0 = scalar_lea.vmem %s48_s29, 4096  ;;  %p1640_p6 = scmp.lt.s32.totalorder %s48_s29, %s48_s29 }
  0x2e   :  { %p1636_p5 = scmp.ne.s32.totalorder %s48_s29, %s1635_s0  ;;  %p1641_p7 = scmp.lt.s32.totalorder %s1635_s0, %s1635_s0 }
  0x30   :  { %p1642_p8 = por %p1641_p7, %p1640_p6 }
  0x32   :  { %p1643_p9 = pnand %p1642_p8, %p1636_p5 }
  0x34   :  { %1646 = shalt.err (!%p1643_p9)
}
  0x35   :  { %53 = dma.hbm_to_vmem [thread:$0]  %s1870_s3, 4096, %s48_s29, [#allocation6], %s1700_s11, %s1700_s11, %s1701_s12  }
  0x36   :  { %s1647_s22 = scalar_lea.hbm %s1872_s5, 2048 }
  0x37   :  { %p1648_p10 = scmp.ne.s32.totalorder %s1872_s5, %s1647_s22  ;;  %p1651_p11 = scmp.lt.u32.totalorder %s1647_s22, %s1872_s5 }
  0x39   :  { %p1653_p12 = pnand %p1651_p11, %p1648_p10 }
  0x3b   :  { %1656 = shalt.err (!%p1653_p12)
}
  0x3c   :  { %s1657_s26 = scalar_lea.vmem %s1777_s8, 2048  ;;  %p1662_p0 = scmp.lt.s32.totalorder %s1777_s8, %s1777_s8 }
  0x3d   :  { %p1658_p13 = scmp.ne.s32.totalorder %s1777_s8, %s1657_s26  ;;  %p1663_p1 = scmp.lt.s32.totalorder %s1657_s26, %s1657_s26 }
  0x3f   :  { %p1664_p2 = por %p1663_p1, %p1662_p0 }
  0x41   :  { %p1665_p3 = pnand %p1664_p2, %p1658_p13 }
  0x43   :  { %1668 = shalt.err (!%p1665_p3)
}
  0x44   :  { %s1707_s3 = smov 64   ;;  %s1708_s27 = smov 4  }
  0x45   :  { %67 = dma.hbm_to_vmem [thread:$0]  %s1872_s5, 2048, %s1777_s8, [#allocation9], %s1707_s3, %s1707_s3, %s1708_s27  }
  0x46   :  { %1691 = dma.done.wait [#allocation3], 4096  }
  0x47   :  { %1692 = vsyncadd [#allocation3], 4294963200 }
  0x48   :  { %1693 = dma.done.wait [#allocation6], 12288  }
  0x49   :  { %1694 = vsyncadd [#allocation6], 4294955008 }
  0x4a   :  { %1695 = dma.done.wait [#allocation9], 2048  }
  0x4b   :  { %1696 = vsyncadd [#allocation9], 4294965248  ;;  %v1421_v0 = vld [vmem:[#allocation5 + $0x4] ss:$8 sps:$4 sm:$0xff]   ;;  %v1423_v1 = vld [vmem:[#allocation5] ss:$8 sps:$4 sm:$0xff]  }
  0x4c   :  { %527 = vmatprep.subr.bf16.mxu0 %v1421_v0  ;;  %v1424_v2 = vld [vmem:[#allocation5 + $0x14] ss:$8 sps:$4 sm:$0xff]   ;;  %v1426_v3 = vld [vmem:[#allocation5 + $0x10] ss:$8 sps:$4 sm:$0xff]   ;;  %v1427_v4 = vld [vmem:[#allocation5 + $0x24] ss:$8 sps:$4 sm:$0xff]  }
  0x4d   :  { %528 = vmatpush1.bf16.msra.mxu0 %v1423_v1  ;;  %v1429_v5 = vld [vmem:[#allocation5 + $0x20] ss:$8 sps:$4 sm:$0xff]   ;;  %v1430_v6 = vld [vmem:[#allocation5 + $0x34] ss:$8 sps:$4 sm:$0xff]   ;;  %v1432_v7 = vld [vmem:[#allocation5 + $0x30] ss:$8 sps:$4 sm:$0xff]  }
  0x4e   :  { %529 = vmatprep.subr.bf16.mxu0 %v1424_v2  ;;  %v1433_v8 = vld [vmem:[#allocation5 + $0x44] ss:$8 sps:$4 sm:$0xff]   ;;  %v1435_v9 = vld [vmem:[#allocation5 + $0x40] ss:$8 sps:$4 sm:$0xff]   ;;  %v1436_v10 = vld [vmem:[#allocation5 + $0x54] ss:$8 sps:$4 sm:$0xff]  }
  0x4f   :  { %v1438_v11 = vld [vmem:[#allocation5 + $0x50] ss:$8 sps:$4 sm:$0xff]   ;;  %v1439_v12 = vld [vmem:[#allocation5 + $0x64] ss:$8 sps:$4 sm:$0xff]   ;;  %v1441_v16 = vld [vmem:[#allocation5 + $0x60] ss:$8 sps:$4 sm:$0xff]  }
  0x50   :  { %v84_v13 = vld [vmem:[#allocation2 + $0x8] sm:$0xff]  ;;  %v1442_v17 = vld [vmem:[#allocation5 + $0x74] ss:$8 sps:$4 sm:$0xff]   ;;  %v1444_v18 = vld [vmem:[#allocation5 + $0x70] ss:$8 sps:$4 sm:$0xff]  }
  0x51   :  { %530 = vmatpush1.bf16.msra.mxu0 %v1426_v3  ;;  %v88_v14 = vld [vmem:[#allocation2 + $0x28] sm:$0xff]  ;;  %v1448_v21 = vld [vmem:[#allocation5 + $0x94] ss:$8 sps:$4 sm:$0xff]   ;;  %v1450_v22 = vld [vmem:[#allocation5 + $0x90] ss:$8 sps:$4 sm:$0xff]  }
  0x52   :  { %531 = vmatprep.subr.bf16.mxu0 %v1427_v4  ;;  %v116_v15 = vpack.c.bf16 %v88_v14, %v84_v13  ;;  %v1445_v19 = vld [vmem:[#allocation5 + $0x84] ss:$8 sps:$4 sm:$0xff]   ;;  %v1447_v20 = vld [vmem:[#allocation5 + $0x80] ss:$8 sps:$4 sm:$0xff]   ;;  %v1454_v25 = vld [vmem:[#allocation5 + $0xb4] ss:$8 sps:$4 sm:$0xff]  }
  0x53   :  { %v1451_v23 = vld [vmem:[#allocation5 + $0xa4] ss:$8 sps:$4 sm:$0xff]   ;;  %v1453_v24 = vld [vmem:[#allocation5 + $0xa0] ss:$8 sps:$4 sm:$0xff]   ;;  %v1456_v26 = vld [vmem:[#allocation5 + $0xb0] ss:$8 sps:$4 sm:$0xff]  }
  0x54   :  { %559 = vmatprep.mubr.bf16.mxu0 %v116_v15  ;;  %v1457_v27 = vld [vmem:[#allocation5 + $0xc4] ss:$8 sps:$4 sm:$0xff]   ;;  %v1459_v28 = vld [vmem:[#allocation5 + $0xc0] ss:$8 sps:$4 sm:$0xff]   ;;  %v1460_v29 = vld [vmem:[#allocation5 + $0xd4] ss:$8 sps:$4 sm:$0xff]  }
  0x55   :  { %532 = vmatpush1.bf16.msra.mxu0 %v1429_v5  ;;  %v1462_v30 = vld [vmem:[#allocation5 + $0xd0] ss:$8 sps:$4 sm:$0xff]   ;;  %v1463_v31 = vld [vmem:[#allocation5 + $0xe4] ss:$8 sps:$4 sm:$0xff]   ;;  %v1519_v33 = vld [vmem:[#allocation7] ss:$8 sps:$4 sm:$0xff]  }
  0x56   :  { %533 = vmatprep.subr.bf16.mxu0 %v1430_v6  ;;  %v1517_v32 = vld [vmem:[#allocation7 + $0x4] ss:$8 sps:$4 sm:$0xff]   ;;  %v1465_v34 = vld [vmem:[#allocation5 + $0xe0] ss:$8 sps:$4 sm:$0xff]   ;;  %v1520_v35 = vld [vmem:[#allocation7 + $0x14] ss:$8 sps:$4 sm:$0xff]  }
  0x57   :  { %v1466_v36 = vld [vmem:[#allocation5 + $0xf4] ss:$8 sps:$4 sm:$0xff]   ;;  %901 = vmatprep.subr.bf16.mxu1 %v1517_v32  ;;  %v1468_v37 = vld [vmem:[#allocation5 + $0xf0] ss:$8 sps:$4 sm:$0xff]   ;;  %v1471_v39 = vld [vmem:[#allocation5 + $0x104] ss:$8 sps:$4 sm:$0xff]  }
  0x58   :  { %902 = vmatpush1.bf16.msra.mxu1 %v1519_v33  ;;  %v1522_v38 = vld [vmem:[#allocation7 + $0x10] ss:$8 sps:$4 sm:$0xff]   ;;  %v83_v40 = vld [vmem:[#allocation2] sm:$0xff]  ;;  %v92_v43 = vld [vmem:[#allocation2 + $0x48] sm:$0xff] }
  0x59   :  { %534 = vmatpush1.bf16.msra.mxu0 %v1432_v7  ;;  %903 = vmatprep.subr.bf16.mxu1 %v1520_v35  ;;  %v1523_v41 = vld [vmem:[#allocation7 + $0x24] ss:$8 sps:$4 sm:$0xff]   ;;  %v1525_v45 = vld [vmem:[#allocation7 + $0x20] ss:$8 sps:$4 sm:$0xff]   ;;  %v1526_v47 = vld [vmem:[#allocation7 + $0x34] ss:$8 sps:$4 sm:$0xff]  }
  0x5a   :  { %535 = vmatprep.subr.bf16.mxu0 %v1433_v8  ;;  %v87_v42 = vld [vmem:[#allocation2 + $0x20] sm:$0xff]  ;;  %v96_v44 = vld [vmem:[#allocation2 + $0x68] sm:$0xff]  ;;  %v1474_v50 = vld [vmem:[#allocation5 + $0x114] ss:$8 sps:$4 sm:$0xff]  }
  0x5b   :  { %v115_v46 = vpack.c.bf16 %v87_v42, %v83_v40  ;;  %v1469_v48 = vld [vmem:[#allocation5 + $0x100] ss:$8 sps:$4 sm:$0xff]   ;;  %v120_v49 = vpack.c.bf16 %v96_v44, %v92_v43  ;;  %v1472_v51 = vld [vmem:[#allocation5 + $0x110] ss:$8 sps:$4 sm:$0xff]   ;;  %v1477_v53 = vld [vmem:[#allocation5 + $0x124] ss:$8 sps:$4 sm:$0xff]  }
  0x5c   :  { %904 = vmatpush1.bf16.msra.mxu1 %v1522_v38  ;;  %v1528_v52 = vld [vmem:[#allocation7 + $0x30] ss:$8 sps:$4 sm:$0xff]   ;;  %v91_v54 = vld [vmem:[#allocation2 + $0x40] sm:$0xff]  ;;  %v100_v57 = vld [vmem:[#allocation2 + $0x88] sm:$0xff] }
  0x5d   :  { %536 = vmatpush1.bf16.msra.mxu0 %v1435_v9  ;;  %905 = vmatprep.subr.bf16.mxu1 %v1523_v41  ;;  %v1529_v55 = vld [vmem:[#allocation7 + $0x44] ss:$8 sps:$4 sm:$0xff]   ;;  %v1531_v59 = vld [vmem:[#allocation7 + $0x40] ss:$8 sps:$4 sm:$0xff]   ;;  %v1532_v62 = vld [vmem:[#allocation7 + $0x54] ss:$8 sps:$4 sm:$0xff]  }
  0x5e   :  { %537 = vmatprep.subr.bf16.mxu0 %v1436_v10  ;;  %v95_v56 = vld [vmem:[#allocation2 + $0x60] sm:$0xff]  ;;  %v104_v58 = vld [vmem:[#allocation2 + $0xa8] sm:$0xff]  ;;  %v1480_v63 = vld [vmem:[#allocation5 + $0x134] ss:$8 sps:$4 sm:$0xff]  }
  0x5f   :  { %v1475_v60 = vld [vmem:[#allocation5 + $0x120] ss:$8 sps:$4 sm:$0xff]   ;;  %v119_v61 = vpack.c.bf16 %v95_v56, %v91_v54  ;;  %v124_v0 = vpack.c.bf16 %v104_v58, %v100_v57  ;;  %v1534_v1 = vld [vmem:[#allocation7 + $0x50] ss:$8 sps:$4 sm:$0xff]   ;;  %v1535_v2 = vld [vmem:[#allocation7 + $0x64] ss:$8 sps:$4 sm:$0xff]  }
  0x60   :  { %906 = vmatpush1.bf16.msra.mxu1 %v1525_v45  ;;  %v1478_v3 = vld [vmem:[#allocation5 + $0x130] ss:$8 sps:$4 sm:$0xff]   ;;  %v99_v4 = vld [vmem:[#allocation2 + $0x80] sm:$0xff]  ;;  %v108_v7 = vld [vmem:[#allocation2 + $0xc8] sm:$0xff] }
  0x61   :  { %538 = vmatpush1.bf16.msra.mxu0 %v1438_v11  ;;  %907 = vmatprep.subr.bf16.mxu1 %v1526_v47  ;;  %v103_v5 = vld [vmem:[#allocation2 + $0xa0] sm:$0xff]  ;;  %v112_v8 = vld [vmem:[#allocation2 + $0xe8] sm:$0xff]  ;;  %v1538_v10 = vld [vmem:[#allocation7 + $0x74] ss:$8 sps:$4 sm:$0xff]  }
  0x62   :  { %539 = vmatprep.subr.bf16.mxu0 %v1439_v12  ;;  %v1483_v6 = vld [vmem:[#allocation5 + $0x144] ss:$8 sps:$4 sm:$0xff]   ;;  %v1537_v9 = vld [vmem:[#allocation7 + $0x60] ss:$8 sps:$4 sm:$0xff]   ;;  %v1486_v12 = vld [vmem:[#allocation5 + $0x154] ss:$8 sps:$4 sm:$0xff]   ;;  %v123_v13 = vpack.c.bf16 %v103_v5, %v99_v4  ;;  %v128_v14 = vpack.c.bf16 %v112_v8, %v108_v7 }
  0x63   :  { %v1481_v11 = vld [vmem:[#allocation5 + $0x140] ss:$8 sps:$4 sm:$0xff]   ;;  %v1540_v15 = vld [vmem:[#allocation7 + $0x70] ss:$8 sps:$4 sm:$0xff]   ;;  %v1495_v32 = vld [vmem:[#allocation5 + $0x184] ss:$8 sps:$4 sm:$0xff]  }
  0x64   :  { %908 = vmatpush1.bf16.msra.mxu1 %v1528_v52  ;;  %v1549_v33 = vld [vmem:[#allocation7 + $0xa0] ss:$8 sps:$4 sm:$0xff]   ;;  %v1553_v38 = vld [vmem:[#allocation7 + $0xc4] ss:$8 sps:$4 sm:$0xff]   ;;  %v1556_v42 = vld [vmem:[#allocation7 + $0xd4] ss:$8 sps:$4 sm:$0xff]  }
  0x65   :  { %540 = vmatpush1.bf16.msra.mxu0 %v1441_v16  ;;  %909 = vmatprep.subr.bf16.mxu1 %v1529_v55  ;;  %v1541_v16 = vld [vmem:[#allocation7 + $0x84] ss:$8 sps:$4 sm:$0xff]   ;;  %v1493_v35 = vld [vmem:[#allocation5 + $0x180] ss:$8 sps:$4 sm:$0xff]   ;;  %v1504_v44 = vld [vmem:[#allocation5 + $0x1b4] ss:$8 sps:$4 sm:$0xff]  }
  0x66   :  { %541 = vmatprep.subr.bf16.mxu0 %v1442_v17  ;;  %v1484_v17 = vld [vmem:[#allocation5 + $0x150] ss:$8 sps:$4 sm:$0xff]   ;;  %v1501_v40 = vld [vmem:[#allocation5 + $0x1a4] ss:$8 sps:$4 sm:$0xff]   ;;  %v1555_v41 = vld [vmem:[#allocation7 + $0xc0] ss:$8 sps:$4 sm:$0xff]  }
  0x67   :  { %v1499_v43 = vld [vmem:[#allocation5 + $0x1a0] ss:$8 sps:$4 sm:$0xff]   ;;  %v1502_v45 = vld [vmem:[#allocation5 + $0x1b0] ss:$8 sps:$4 sm:$0xff]   ;;  %v1516_v52 = vld [vmem:[#allocation5 + $0x1f4] ss:$8 sps:$4 sm:$0xff]  }
  0x68   :  { %910 = vmatpush1.bf16.msra.mxu1 %v1531_v59  ;;  %v1505_v47 = vld [vmem:[#allocation5 + $0x1c0] ss:$8 sps:$4 sm:$0xff]   ;;  %v85_v54 = vld [vmem:[#allocation2 + $0x10] sm:$0xff]  ;;  %v94_v56 = vld [vmem:[#allocation2 + $0x58] sm:$0xff] }
  0x69   :  { %542 = vmatpush1.bf16.msra.mxu0 %v1444_v18  ;;  %911 = vmatprep.subr.bf16.mxu1 %v1532_v62  ;;  %v107_v18 = vld [vmem:[#allocation2 + $0xc0] sm:$0xff]  ;;  %v89_v55 = vld [vmem:[#allocation2 + $0x30] sm:$0xff]  ;;  %v98_v57 = vld [vmem:[#allocation2 + $0x78] sm:$0xff] }
  0x6a   :  { %543 = vmatprep.subr.bf16.mxu0 %v1445_v19  ;;  %v111_v19 = vld [vmem:[#allocation2 + $0xe0] sm:$0xff]  ;;  %v117_v58 = vpack.c.bf16 %v89_v55, %v85_v54  ;;  %v122_v59 = vpack.c.bf16 %v98_v57, %v94_v56  ;;  %v102_v62 = vld [vmem:[#allocation2 + $0x98] sm:$0xff]  ;;  %v109_v8 = vld [vmem:[#allocation2 + $0xd0] sm:$0xff] }
  0x6b   :  { %v110_v4 = vld [vmem:[#allocation2 + $0xd8] sm:$0xff]  ;;  %v1570_v57 = vld [vmem:[#allocation8 + $0x10] sm:$0xff]  }
  0x6c   :  { %912 = vmatpush1.bf16.msra.mxu1 %v1534_v1  ;;  %v114_v5 = vld [vmem:[#allocation2 + $0xf8] sm:$0xff] }
  0x6d   :  { %544 = vmatpush1.bf16.msra.mxu0 %v1447_v20  ;;  %913 = vmatprep.subr.bf16.mxu1 %v1535_v2  ;;  %v1489_v20 = vld [vmem:[#allocation5 + $0x164] ss:$8 sps:$4 sm:$0xff]   ;;  %v101_v2 = vld [vmem:[#allocation2 + $0x90] sm:$0xff]  ;;  %v130_v7 = vpack.c.bf16 %v114_v5, %v110_v4 }
  0x6e   :  { %545 = vmatprep.subr.bf16.mxu0 %v1448_v21  ;;  %v86_v21 = vld [vmem:[#allocation2 + $0x18] sm:$0xff]  ;;  %v1573_v5 = vld [vmem:[#allocation8 + $0x60] sm:$0xff]  }
  0x70   :  { %914 = vmatpush1.bf16.msra.mxu1 %v1537_v9  ;;  %v113_v9 = vld [vmem:[#allocation2 + $0xf0] sm:$0xff] }
  0x71   :  { %546 = vmatpush1.bf16.msra.mxu0 %v1450_v22  ;;  %915 = vmatprep.subr.bf16.mxu1 %v1538_v10  ;;  %v90_v22 = vld [vmem:[#allocation2 + $0x38] sm:$0xff]  ;;  %v129_v10 = vpack.c.bf16 %v113_v9, %v109_v8 }
  0x72   :  { %547 = vmatprep.subr.bf16.mxu0 %v1451_v23  ;;  %v1543_v23 = vld [vmem:[#allocation7 + $0x80] ss:$8 sps:$4 sm:$0xff]  }
  0x74   :  { %916 = vmatpush1.bf16.msra.mxu1 %v1540_v15  ;;  %v1564_v15 = vld [vmem:[#allocation7 + $0xf0] ss:$8 sps:$4 sm:$0xff]  }
  0x75   :  { %548 = vmatpush1.bf16.msra.mxu0 %v1453_v24  ;;  %v127_v24 = vpack.c.bf16 %v111_v19, %v107_v18  ;;  %917 = vmatprep.subr.bf16.mxu1 %v1541_v16  ;;  %v1565_v16 = vld [vmem:[#allocation8 + $0x40] sm:$0xff]  }
  0x76   :  { %549 = vmatprep.subr.bf16.mxu0 %v1454_v25  ;;  %v1544_v25 = vld [vmem:[#allocation7 + $0x94] ss:$8 sps:$4 sm:$0xff]  }
  0x78   :  { %918 = vmatpush1.bf16.msra.mxu1 %v1543_v23 }
  0x79   :  { %550 = vmatpush1.bf16.msra.mxu0 %v1456_v26  ;;  %v1487_v26 = vld [vmem:[#allocation5 + $0x160] ss:$8 sps:$4 sm:$0xff]   ;;  %919 = vmatprep.subr.bf16.mxu1 %v1544_v25 }
  0x7a   :  { %551 = vmatprep.subr.bf16.mxu0 %v1457_v27  ;;  %v118_v27 = vpack.c.bf16 %v90_v22, %v86_v21 }
  0x7d   :  { %552 = vmatpush1.bf16.msra.mxu0 %v1459_v28  ;;  %v1492_v28 = vld [vmem:[#allocation5 + $0x174] ss:$8 sps:$4 sm:$0xff]  }
  0x7e   :  { %553 = vmatprep.subr.bf16.mxu0 %v1460_v29  ;;  %v1546_v29 = vld [vmem:[#allocation7 + $0x90] ss:$8 sps:$4 sm:$0xff]  }
  0x7f   :  { %920 = vmatpush1.bf16.msra.mxu1 %v1546_v29 }
  0x81   :  { %554 = vmatpush1.bf16.msra.mxu0 %v1462_v30  ;;  %v1547_v30 = vld [vmem:[#allocation7 + $0xa4] ss:$8 sps:$4 sm:$0xff]  }
  0x82   :  { %555 = vmatprep.subr.bf16.mxu0 %v1463_v31  ;;  %v1490_v31 = vld [vmem:[#allocation5 + $0x170] ss:$8 sps:$4 sm:$0xff]   ;;  %921 = vmatprep.subr.bf16.mxu1 %v1547_v30 }
  0x83   :  { %922 = vmatpush1.bf16.msra.mxu1 %v1549_v33 }
  0x85   :  { %556 = vmatpush1.bf16.msra.mxu0 %v1465_v34  ;;  %v1550_v34 = vld [vmem:[#allocation7 + $0xb4] ss:$8 sps:$4 sm:$0xff]  }
  0x86   :  { %557 = vmatprep.subr.bf16.mxu0 %v1466_v36  ;;  %v1498_v36 = vld [vmem:[#allocation5 + $0x194] ss:$8 sps:$4 sm:$0xff]   ;;  %923 = vmatprep.subr.bf16.mxu1 %v1550_v34 }
  0x89   :  { %558 = vmatpush1.bf16.msra.mxu0 %v1468_v37  ;;  %v1552_v37 = vld [vmem:[#allocation7 + $0xb0] ss:$8 sps:$4 sm:$0xff]  }
  0x8a   :  { %600 = vmatprep.subr.bf16.mxu0 %v1471_v39  ;;  %v1496_v39 = vld [vmem:[#allocation5 + $0x190] ss:$8 sps:$4 sm:$0xff]   ;;  %924 = vmatpush1.bf16.msra.mxu1 %v1552_v37 }
  0x8b   :  { %925 = vmatprep.subr.bf16.mxu1 %v1553_v38 }
  0x8c   :  { %560 = vmatmul.mubr.bf16.vlgmr.msra.gmra.mrb[0].mxu0 %v115_v46  ;;  %v1507_v46 = vld [vmem:[#allocation5 + $0x1c4] ss:$8 sps:$4 sm:$0xff]  }
  0x8d   :  { %601 = vmatpush1.bf16.msra.mxu0 %v1469_v48  ;;  %569 = vmatprep.mubr.bf16.mxu0 %v120_v49  ;;  %v1510_v48 = vld [vmem:[#allocation5 + $0x1d4] ss:$8 sps:$4 sm:$0xff]   ;;  %v1508_v49 = vld [vmem:[#allocation5 + $0x1d0] ss:$8 sps:$4 sm:$0xff]  }
  0x8e   :  { %602 = vmatprep.subr.bf16.mxu0 %v1474_v50  ;;  %926 = vmatpush1.bf16.msra.mxu1 %v1555_v41  ;;  %v1513_v50 = vld [vmem:[#allocation5 + $0x1e4] ss:$8 sps:$4 sm:$0xff]  }
  0x8f   :  { %927 = vmatprep.subr.bf16.mxu1 %v1556_v42  ;;  %v1567_v42 = vld [vmem:[#allocation8 + $0x48] sm:$0xff]  }
  0x91   :  { %603 = vmatpush1.bf16.msra.mxu0 %v1472_v51  ;;  %v1511_v51 = vld [vmem:[#allocation5 + $0x1e0] ss:$8 sps:$4 sm:$0xff]  }
  0x92   :  { %604 = vmatprep.subr.bf16.mxu0 %v1477_v53  ;;  %v1514_v53 = vld [vmem:[#allocation5 + $0x1f0] ss:$8 sps:$4 sm:$0xff]  }
  0x94   :  { %570 = vmatmul.mubr.bf16.gmra.mrb[4].mxu0 %v119_v61  ;;  %v97_v61 = vld [vmem:[#allocation2 + $0x70] sm:$0xff] }
  0x95   :  { %605 = vmatpush1.bf16.msra.mxu0 %v1475_v60  ;;  %579 = vmatprep.mubr.bf16.mxu0 %v124_v0  ;;  %v93_v60 = vld [vmem:[#allocation2 + $0x50] sm:$0xff] }
  0x96   :  { %606 = vmatprep.subr.bf16.mxu0 %v1480_v63  ;;  %v106_v63 = vld [vmem:[#allocation2 + $0xb8] sm:$0xff]  ;;  %v121_v0 = vpack.c.bf16 %v97_v61, %v93_v60 }
  0x97   :  { %v126_v1 = vpack.c.bf16 %v106_v63, %v102_v62  ;;  %v1571_v60 = vld [vmem:[#allocation8 + $0x58] sm:$0xff]  }
  0x99   :  { %607 = vmatpush1.bf16.msra.mxu0 %v1478_v3  ;;  %v105_v3 = vld [vmem:[#allocation2 + $0xb0] sm:$0xff] }
  0x9a   :  { %608 = vmatprep.subr.bf16.mxu0 %v1483_v6  ;;  %v125_v6 = vpack.c.bf16 %v105_v3, %v101_v2  ;;  %v1572_v2 = vld [vmem:[#allocation8 + $0x18] sm:$0xff]  }
  0x9c   :  { %580 = vmatmul.mubr.bf16.gmra.mrb[8].mxu0 %v123_v13  ;;  %v1561_v13 = vld [vmem:[#allocation7 + $0xe0] ss:$8 sps:$4 sm:$0xff]  }
  0x9d   :  { %609 = vmatpush1.bf16.msra.mxu0 %v1481_v11  ;;  %589 = vmatprep.mubr.bf16.mxu0 %v128_v14  ;;  %v1558_v11 = vld [vmem:[#allocation7 + $0xd0] ss:$8 sps:$4 sm:$0xff]   ;;  %v1562_v14 = vld [vmem:[#allocation7 + $0xf4] ss:$8 sps:$4 sm:$0xff]  }
  0x9e   :  { %610 = vmatprep.subr.bf16.mxu0 %v1486_v12  ;;  %928 = vmatpush1.bf16.msra.mxu1 %v1558_v11  ;;  %v1559_v12 = vld [vmem:[#allocation7 + $0xe4] ss:$8 sps:$4 sm:$0xff]  }
  0x9f   :  { %929 = vmatprep.subr.bf16.mxu1 %v1559_v12  ;;  %v1574_v11 = vld [vmem:[#allocation8 + $0x20] sm:$0xff]  }
  0xa1   :  { %611 = vmatpush1.bf16.msra.mxu0 %v1484_v17  ;;  %v197_v17 = vlaneseq }
  0xa2   :  { %612 = vmatprep.subr.bf16.mxu0 %v1489_v20  ;;  %930 = vmatpush1.bf16.msra.mxu1 %v1561_v13  ;;  %v195_v20 = vld [vmem:[%s1869_s2] sm:$0x3] }
  0xa3   :  { %931 = vmatprep.subr.bf16.mxu1 %v1562_v14  ;;  %v1811_v18 = vshrl.u32 %v197_v17, 7  ;;  %v1575_v14 = vld [vmem:[#allocation8 + $0x68] sm:$0xff]  }
  0xa4   :  { %590 = vmatmul.mubr.bf16.gmra.mrb[12].mxu0 %v127_v24 }
  0xa5   :  { %613 = vmatpush1.bf16.msra.mxu0 %v1487_v26  ;;  %632 = vmatprep.mubr.bf16.mxu0 %v118_v27  ;;  %v199_v19 = vsub.s32 0, %v1811_v18  ;;  %v203_v21 = vsub.s32 1, %v1811_v18 }
  0xa6   :  { %614 = vmatprep.subr.bf16.mxu0 %v1492_v28  ;;  %932 = vmatpush1.bf16.msra.mxu1 %v1564_v15 }
  0xa7   :  { %1338 = vmatprep.subr.bf16.mxu1 %v1565_v16  ;;  %v1820_v22 = vrot.slane %v195_v20, %v199_v19  ;;  %v1824_v23 = vrot.slane %v195_v20, %v203_v21 }
  0xa9   :  { %615 = vmatpush1.bf16.msra.mxu0 %v1490_v31 }
  0xaa   :  { %616 = vmatprep.subr.bf16.mxu0 %v1495_v32 }
  0xad   :  { %617 = vmatpush1.bf16.msra.mxu0 %v1493_v35 }
  0xae   :  { %618 = vmatprep.subr.bf16.mxu0 %v1498_v36 }
  0xb1   :  { %619 = vmatpush1.bf16.msra.mxu0 %v1496_v39  ;;  %v1566_v39 = vld [vmem:[#allocation8] sm:$0xff]  }
  0xb2   :  { %620 = vmatprep.subr.bf16.mxu0 %v1501_v40 }
  0xb5   :  { %621 = vmatpush1.bf16.msra.mxu0 %v1499_v43 }
  0xb6   :  { %622 = vmatprep.subr.bf16.mxu0 %v1504_v44 }
  0xb9   :  { %623 = vmatpush1.bf16.msra.mxu0 %v1502_v45 }
  0xba   :  { %624 = vmatprep.subr.bf16.mxu0 %v1507_v46 }
  0xbd   :  { %625 = vmatpush1.bf16.msra.mxu0 %v1505_v47 }
  0xbe   :  { %626 = vmatprep.subr.bf16.mxu0 %v1510_v48  ;;  %v1568_v48 = vld [vmem:[#allocation8 + $0x8] sm:$0xff]  }
  0xc1   :  { %627 = vmatpush1.bf16.msra.mxu0 %v1508_v49 }
  0xc2   :  { %628 = vmatprep.subr.bf16.mxu0 %v1513_v50 }
  0xc5   :  { %629 = vmatpush1.bf16.msra.mxu0 %v1511_v51  ;;  %v1569_v51 = vld [vmem:[#allocation8 + $0x50] sm:$0xff]  }
  0xc6   :  { %630 = vmatprep.subr.bf16.mxu0 %v1516_v52 }
  0xc9   :  { %631 = vmatpush1.bf16.msra.mxu0 %v1514_v53 }
  0xcc   :  { %633 = vmatmul.mubr.bf16.vlgmr.msra.gmra.mrb[0].mxu0 %v117_v58 }
  0xcd   :  { %642 = vmatprep.mubr.bf16.mxu0 %v122_v59 }
  0xd4   :  { %643 = vmatmul.mubr.bf16.gmra.mrb[4].mxu0 %v121_v0 }
  0xd5   :  { %652 = vmatprep.mubr.bf16.mxu0 %v126_v1 }
  0xdc   :  { %653 = vmatmul.mubr.bf16.gmra.mrb[8].mxu0 %v125_v6 }
  0xdd   :  { %662 = vmatprep.mubr.bf16.mxu0 %v130_v7 }
  0xe4   :  { %663 = vmatmul.mubr.bf16.gmra.mrb[12].mxu0 %v129_v10 }
 0x19f   :  { %v634_v24 = vpop.f32.mrb[0].mxu0 }
 0x1a0   :  { %v1378_v25 = vadd.f32 %v634_v24, %v1820_v22  ;;  %v636_v26 = vpop.f32.mrb[1].mxu0 }
 0x1a1   :  { %v1379_v27 = vadd.f32 %v636_v26, %v1824_v23  ;;  %v638_v28 = vpop.f32.mrb[2].mxu0 }
 0x1a2   :  { %v1380_v29 = vadd.f32 %v638_v28, %v1820_v22  ;;  %v640_v30 = vpop.f32.mrb[3].mxu0  ;;  %v673_v32 = vmax.f32 %v1378_v25, 0.0  ;;  %v1576_v25 = vld [vmem:[#allocation8 + $0x28] sm:$0xff]  }
 0x1a3   :  { %v1381_v31 = vadd.f32 %v640_v30, %v1824_v23  ;;  %v674_v34 = vmax.f32 %v1379_v27, 0.0 }
 0x1a4   :  { %v675_v33 = vmax.f32 %v1380_v29, 0.0 }
 0x1a5   :  { %v676_v35 = vmax.f32 %v1381_v31, 0.0 }
 0x1a6   :  { %v689_v36 = vpack.c.bf16 %v675_v33, %v673_v32  ;;  %v1577_v32 = vld [vmem:[#allocation8 + $0x70] sm:$0xff]  }
 0x1a7   :  { %v644_v37 = vpop.f32.mrb[4].mxu0  ;;  %v690_v38 = vpack.c.bf16 %v676_v35, %v674_v34  ;;  %v1578_v33 = vld [vmem:[#allocation8 + $0x30] sm:$0xff]   ;;  %v1580_v34 = vld [vmem:[#allocation8 + $0x38] sm:$0xff]  }
 0x1a8   :  { %v1382_v40 = vadd.f32 %v644_v37, %v1820_v22  ;;  %v646_v41 = vpop.f32.mrb[5].mxu0 }
 0x1a9   :  { %v1383_v43 = vadd.f32 %v646_v41, %v1824_v23  ;;  %v648_v44 = vpop.f32.mrb[6].mxu0  ;;  %933 = vmatprep.mubr.bf16.mxu1 %v690_v38 }
 0x1aa   :  { %v1384_v45 = vadd.f32 %v648_v44, %v1820_v22  ;;  %v650_v46 = vpop.f32.mrb[7].mxu0  ;;  %934 = vmatmul.mubr.bf16.vlgmr.msra.gmra.mrb[0].mxu1 %v689_v36  ;;  %v677_v49 = vmax.f32 %v1382_v40, 0.0 }
 0x1ab   :  { %v1385_v47 = vadd.f32 %v650_v46, %v1824_v23  ;;  %1339 = vmatpush3.bf16.msra.mxu1 %v1566_v39  ;;  %v678_v52 = vmax.f32 %v1383_v43, 0.0 }
 0x1ac   :  { %v679_v50 = vmax.f32 %v1384_v45, 0.0  ;;  %1340 = vmatprep.subr.bf16.mxu1 %v1567_v42 }
 0x1ad   :  { %v680_v53 = vmax.f32 %v1385_v47, 0.0 }
 0x1ae   :  { %v691_v54 = vpack.c.bf16 %v679_v50, %v677_v49 }
 0x1af   :  { %v692_v55 = vpack.c.bf16 %v680_v53, %v678_v52  ;;  %v654_v56 = vpop.f32.mrb[8].mxu0  ;;  %1341 = vmatpush3.bf16.msra.mxu1 %v1568_v48 }
 0x1b0   :  { %v1386_v58 = vadd.f32 %v654_v56, %v1820_v22  ;;  %v656_v59 = vpop.f32.mrb[9].mxu0  ;;  %1342 = vmatprep.subr.bf16.mxu1 %v1569_v51 }
 0x1b1   :  { %v1387_v61 = vadd.f32 %v656_v59, %v1824_v23  ;;  %v658_v62 = vpop.f32.mrb[10].mxu0  ;;  %943 = vmatprep.mubr.bf16.mxu1 %v692_v55 }
 0x1b2   :  { %v1388_v63 = vadd.f32 %v658_v62, %v1820_v22  ;;  %v660_v0 = vpop.f32.mrb[11].mxu0  ;;  %944 = vmatmul.mubr.bf16.gmra.mrb[4].mxu1 %v691_v54  ;;  %v681_v3 = vmax.f32 %v1386_v58, 0.0 }
 0x1b3   :  { %v1389_v1 = vadd.f32 %v660_v0, %v1824_v23  ;;  %1343 = vmatpush3.bf16.msra.mxu1 %v1570_v57  ;;  %v682_v6 = vmax.f32 %v1387_v61, 0.0 }
 0x1b4   :  { %v683_v4 = vmax.f32 %v1388_v63, 0.0  ;;  %1344 = vmatprep.subr.bf16.mxu1 %v1571_v60 }
 0x1b5   :  { %v684_v7 = vmax.f32 %v1389_v1, 0.0 }
 0x1b6   :  { %v693_v8 = vpack.c.bf16 %v683_v4, %v681_v3 }
 0x1b7   :  { %v694_v9 = vpack.c.bf16 %v684_v7, %v682_v6  ;;  %v664_v10 = vpop.f32.mrb[12].mxu0  ;;  %1345 = vmatpush3.bf16.msra.mxu1 %v1572_v2 }
 0x1b8   :  { %v1390_v12 = vadd.f32 %v664_v10, %v1820_v22  ;;  %v666_v13 = vpop.f32.mrb[13].mxu0  ;;  %1346 = vmatprep.subr.bf16.mxu1 %v1573_v5 }
 0x1b9   :  { %v1391_v15 = vadd.f32 %v666_v13, %v1824_v23  ;;  %v668_v16 = vpop.f32.mrb[14].mxu0  ;;  %953 = vmatprep.mubr.bf16.mxu1 %v694_v9 }
 0x1ba   :  { %v1392_v17 = vadd.f32 %v668_v16, %v1820_v22  ;;  %v670_v20 = vpop.f32.mrb[15].mxu0  ;;  %954 = vmatmul.mubr.bf16.gmra.mrb[8].mxu1 %v693_v8  ;;  %v685_v26 = vmax.f32 %v1390_v12, 0.0  ;;  %v1579_v22 = vld [vmem:[#allocation8 + $0x78] sm:$0xff]  }
 0x1bb   :  { %v1393_v24 = vadd.f32 %v670_v20, %v1824_v23  ;;  %1347 = vmatpush3.bf16.msra.mxu1 %v1574_v11  ;;  %v686_v28 = vmax.f32 %v1391_v15, 0.0  ;;  %v729_v23 = vld [vmem:[%s1871_s4] sm:$0x3] }
 0x1bc   :  { %v687_v27 = vmax.f32 %v1392_v17, 0.0  ;;  %1348 = vmatprep.subr.bf16.mxu1 %v1575_v14  ;;  %v734_v35 = vrot.slane %v729_v23, %v199_v19  ;;  %v738_v36 = vrot.slane %v729_v23, %v203_v21 }
 0x1bd   :  { %v688_v29 = vmax.f32 %v1393_v24, 0.0 }
 0x1be   :  { %v695_v30 = vpack.c.bf16 %v687_v27, %v685_v26 }
 0x1bf   :  { %v696_v31 = vpack.c.bf16 %v688_v29, %v686_v28  ;;  %1349 = vmatpush3.bf16.msra.mxu1 %v1576_v25 }
 0x1c0   :  { %1350 = vmatprep.subr.bf16.mxu1 %v1577_v32  ;;  %v1321_v32 = vld [vmem:[%s1873_s6] ss:$0 sm:$0xff]  ;;  %s1709_s6 = smov [#allocation10]  }
 0x1c1   :  { %963 = vmatprep.mubr.bf16.mxu1 %v696_v31  ;;  %s1211_s10 = sshll.u32 %s1709_s6, 4  ;;  %s1212_s10 = int_to_ptr.vmem [resolvable:$true] %s1211_s10 }
 0x1c2   :  { %964 = vmatmul.mubr.bf16.gmra.mrb[12].mxu1 %v695_v30  ;;  %s1669_s13 = scalar_lea.vmem %s1212_s10, 1024  ;;  %p1674_p5 = scmp.lt.s32.totalorder %s1212_s10, %s1212_s10 }
 0x1c3   :  { %1351 = vmatpush3.bf16.msra.mxu1 %v1578_v33  ;;  %p1670_p4 = scmp.ne.s32.totalorder %s1212_s10, %s1669_s13  ;;  %p1675_p6 = scmp.lt.s32.totalorder %s1669_s13, %s1669_s13 }
 0x1c4   :  { %1352 = vmatprep.subr.bf16.mxu1 %v1579_v22 }
 0x1c5   :  { %p1676_p7 = por %p1675_p6, %p1674_p5 }
 0x1c7   :  { %1353 = vmatpush3.bf16.msra.mxu1 %v1580_v34  ;;  %p1677_p8 = pnand %p1676_p7, %p1670_p4 }
 0x27d   :  { %v935_v37 = vpop.f32.mrb[0].mxu1 }
 0x27e   :  { %v936_v38 = vadd.f32 %v935_v37, %v734_v35  ;;  %v937_v39 = vpop.f32.mrb[1].mxu1 }
 0x27f   :  { %v938_v40 = vadd.f32 %v937_v39, %v738_v36  ;;  %v939_v41 = vpop.f32.mrb[2].mxu1 }
 0x280   :  { %v940_v42 = vadd.f32 %v939_v41, %v734_v35  ;;  %v941_v43 = vpop.f32.mrb[3].mxu1  ;;  %v974_v45 = vmax.f32 %v936_v38, 0.0 }
 0x281   :  { %v942_v44 = vadd.f32 %v941_v43, %v738_v36  ;;  %v975_v47 = vmax.f32 %v938_v40, 0.0 }
 0x282   :  { %v976_v46 = vmax.f32 %v940_v42, 0.0 }
 0x283   :  { %v977_v48 = vmax.f32 %v942_v44, 0.0 }
 0x284   :  { %v990_v49 = vpack.c.bf16 %v976_v46, %v974_v45 }
 0x285   :  { %v991_v50 = vpack.c.bf16 %v977_v48, %v975_v47  ;;  %v945_v51 = vpop.f32.mrb[4].mxu1 }
 0x286   :  { %v946_v52 = vadd.f32 %v945_v51, %v734_v35  ;;  %v947_v19 = vpop.f32.mrb[5].mxu1 }
 0x287   :  { %v948_v53 = vadd.f32 %v947_v19, %v738_v36  ;;  %v949_v18 = vpop.f32.mrb[6].mxu1  ;;  %1165 = vmatprep.mubr.bf16.mxu1 %v991_v50 }
 0x288   :  { %v950_v21 = vadd.f32 %v949_v18, %v734_v35  ;;  %v951_v54 = vpop.f32.mrb[7].mxu1  ;;  %1166 = vmatmul.mubr.bf16.vlgmr.msra.gmra.mrb[16].mxu1 %v990_v49  ;;  %v978_v56 = vmax.f32 %v946_v52, 0.0 }
 0x289   :  { %v952_v55 = vadd.f32 %v951_v54, %v738_v36  ;;  %v979_v58 = vmax.f32 %v948_v53, 0.0 }
 0x28a   :  { %v980_v57 = vmax.f32 %v950_v21, 0.0 }
 0x28b   :  { %v981_v59 = vmax.f32 %v952_v55, 0.0 }
 0x28c   :  { %v992_v60 = vpack.c.bf16 %v980_v57, %v978_v56 }
 0x28d   :  { %v993_v61 = vpack.c.bf16 %v981_v59, %v979_v58  ;;  %v955_v62 = vpop.f32.mrb[8].mxu1 }
 0x28e   :  { %v956_v63 = vadd.f32 %v955_v62, %v734_v35  ;;  %v957_v0 = vpop.f32.mrb[9].mxu1 }
 0x28f   :  { %v958_v1 = vadd.f32 %v957_v0, %v738_v36  ;;  %v959_v2 = vpop.f32.mrb[10].mxu1  ;;  %1173 = vmatprep.mubr.bf16.mxu1 %v993_v61 }
 0x290   :  { %v960_v3 = vadd.f32 %v959_v2, %v734_v35  ;;  %v961_v4 = vpop.f32.mrb[11].mxu1  ;;  %1174 = vmatmul.mubr.bf16.gmra.mrb[20].mxu1 %v992_v60  ;;  %v982_v6 = vmax.f32 %v956_v63, 0.0 }
 0x291   :  { %v962_v5 = vadd.f32 %v961_v4, %v738_v36  ;;  %v983_v8 = vmax.f32 %v958_v1, 0.0 }
 0x292   :  { %v984_v7 = vmax.f32 %v960_v3, 0.0 }
 0x293   :  { %v985_v9 = vmax.f32 %v962_v5, 0.0 }
 0x294   :  { %v994_v10 = vpack.c.bf16 %v984_v7, %v982_v6 }
 0x295   :  { %v995_v11 = vpack.c.bf16 %v985_v9, %v983_v8  ;;  %v965_v12 = vpop.f32.mrb[12].mxu1 }
 0x296   :  { %v966_v13 = vadd.f32 %v965_v12, %v734_v35  ;;  %v967_v14 = vpop.f32.mrb[13].mxu1 }
 0x297   :  { %v968_v15 = vadd.f32 %v967_v14, %v738_v36  ;;  %v969_v16 = vpop.f32.mrb[14].mxu1  ;;  %1181 = vmatprep.mubr.bf16.mxu1 %v995_v11 }
 0x298   :  { %v970_v17 = vadd.f32 %v969_v16, %v734_v35  ;;  %v971_v20 = vpop.f32.mrb[15].mxu1  ;;  %1182 = vmatmul.mubr.bf16.gmra.mrb[24].mxu1 %v994_v10  ;;  %v986_v25 = vmax.f32 %v966_v13, 0.0 }
 0x299   :  { %v972_v24 = vadd.f32 %v971_v20, %v738_v36  ;;  %v987_v27 = vmax.f32 %v968_v15, 0.0 }
 0x29a   :  { %v988_v26 = vmax.f32 %v970_v17, 0.0 }
 0x29b   :  { %v989_v28 = vmax.f32 %v972_v24, 0.0 }
 0x29c   :  { %v996_v29 = vpack.c.bf16 %v988_v26, %v986_v25 }
 0x29d   :  { %v997_v30 = vpack.c.bf16 %v989_v28, %v987_v27 }
 0x29f   :  { %1189 = vmatprep.mubr.bf16.mxu1 %v997_v30 }
 0x2a0   :  { %1190 = vmatmul.mubr.bf16.gmra.mrb[28].mxu1 %v996_v29 }
 0x35b   :  { %v1354_v31 = vpop.f32.mrb[16].mxu1 }
 0x35c   :  { %v1355_v33 = vpop.f32.mrb[17].mxu1 }
 0x35d   :  { %v1356_v22 = vadd.f32 %v1355_v33, %v1354_v31  ;;  %v1357_v34 = vpop.f32.mrb[18].mxu1 }
 0x35e   :  { %v1358_v23 = vpop.f32.mrb[19].mxu1 }
 0x35f   :  { %v1168_v35 = vadd.f32 %v1356_v22, %v1321_v32  ;;  %v1359_v37 = vadd.f32 %v1358_v23, %v1357_v34 }
 0x361   :  { %1198 = vst [vmem:[#allocation10] sm:$0xff] %v1168_v35  ;;  %v1171_v36 = vadd.f32 %v1359_v37, %v1321_v32 }
 0x363   :  { %1199 = vst [vmem:[#allocation10 + $0x8] sm:$0xff] %v1171_v36  ;;  %v1360_v38 = vpop.f32.mrb[20].mxu1 }
 0x364   :  { %v1361_v39 = vpop.f32.mrb[21].mxu1 }
 0x365   :  { %v1362_v40 = vadd.f32 %v1361_v39, %v1360_v38  ;;  %v1363_v41 = vpop.f32.mrb[22].mxu1 }
 0x366   :  { %v1364_v42 = vpop.f32.mrb[23].mxu1 }
 0x367   :  { %v1176_v43 = vadd.f32 %v1362_v40, %v1321_v32  ;;  %v1365_v44 = vadd.f32 %v1364_v42, %v1363_v41 }
 0x369   :  { %1200 = vst [vmem:[#allocation10 + $0x10] sm:$0xff] %v1176_v43  ;;  %v1179_v45 = vadd.f32 %v1365_v44, %v1321_v32 }
 0x36b   :  { %1201 = vst [vmem:[#allocation10 + $0x18] sm:$0xff] %v1179_v45  ;;  %v1366_v46 = vpop.f32.mrb[24].mxu1 }
 0x36c   :  { %v1367_v47 = vpop.f32.mrb[25].mxu1 }
 0x36d   :  { %v1368_v48 = vadd.f32 %v1367_v47, %v1366_v46  ;;  %v1369_v49 = vpop.f32.mrb[26].mxu1 }
 0x36e   :  { %v1370_v50 = vpop.f32.mrb[27].mxu1 }
 0x36f   :  { %v1184_v51 = vadd.f32 %v1368_v48, %v1321_v32  ;;  %v1371_v52 = vadd.f32 %v1370_v50, %v1369_v49 }
 0x371   :  { %1202 = vst [vmem:[#allocation10 + $0x20] sm:$0xff] %v1184_v51  ;;  %v1187_v19 = vadd.f32 %v1371_v52, %v1321_v32 }
 0x373   :  { %1203 = vst [vmem:[#allocation10 + $0x28] sm:$0xff] %v1187_v19  ;;  %v1372_v53 = vpop.f32.mrb[28].mxu1 }
 0x374   :  { %v1373_v18 = vpop.f32.mrb[29].mxu1 }
 0x375   :  { %v1374_v21 = vadd.f32 %v1373_v18, %v1372_v53  ;;  %v1375_v54 = vpop.f32.mrb[30].mxu1 }
 0x376   :  { %v1376_v55 = vpop.f32.mrb[31].mxu1 }
 0x377   :  { %v1192_v56 = vadd.f32 %v1374_v21, %v1321_v32  ;;  %v1377_v57 = vadd.f32 %v1376_v55, %v1375_v54 }
 0x379   :  { %1204 = vst [vmem:[#allocation10 + $0x30] sm:$0xff] %v1192_v56  ;;  %v1195_v58 = vadd.f32 %v1377_v57, %v1321_v32 }
 0x37b   :  { %1205 = vst [vmem:[#allocation10 + $0x38] sm:$0xff] %v1195_v58 }
 0x37c   :  { %1680 = shalt.err (!%p1677_p8)
}
 0x37d   :  { %s1681_s17 = scalar_lea.hbm %s1874_s7, 1024 }
 0x37e   :  { %p1682_p9 = scmp.ne.s32.totalorder %s1874_s7, %s1681_s17  ;;  %p1685_p10 = scmp.lt.u32.totalorder %s1681_s17, %s1874_s7 }
 0x380   :  { %p1687_p11 = pnand %p1685_p10, %p1682_p9 }
 0x382   :  { %1690 = shalt.err (!%p1687_p11)
}
 0x383   :  { %1217 = dma.vmem_to_hbm [thread:$0]  %s1212_s10, 1024, %s1874_s7, [#allocation4], %s1700_s11, %s1700_s11, %s1701_s12  }
 0x384   :  { %1697 = dma.done.wait [#allocation4], 1024  }
 0x385   :  { %1698 = vsyncadd [#allocation4], 4294966272 }
 0x386   :  { %1221 = vsyncpa [#allocation3], 1 }
 0x387   :  { %1222 = vsyncpa [#allocation6], 1 }
 0x388   :  { %1223 = vsyncpa [#allocation9], 1 }
 0x389   :  { %1224 = vsyncpa [#allocation4], 1 }

</bundles_post_ra>
